<compile_context>
chip_gen: v7x
topology: tpu7x:2x2x1
jax: 0.10.0
libtpu: 0.0.40
codegen_flags: <defaults>
</compile_context>

<pallas_src>
import math

import jax
import jax.numpy as jnp
from jax.experimental import pallas as pl
from jax.experimental.pallas import tpu as pltpu

_MIN_TB = 128   # lane granule: the batch lives in lanes
_SUBLANE = 8    # sublane granule: the action dim rounds up to this


def _round_up(x, m):
    return ((x + m - 1) // m) * m


def _choose_tile(B, block_b):
    """Batch tile (multiple of 128 lanes).  Uses >=2 tiles when the batch is
    big enough (v7x megacore) and sizes tiles so the last one is not mostly
    padding."""
    n_tiles = pl.cdiv(B, block_b)
    if B >= 2 * _MIN_TB:
        n_tiles = max(n_tiles, 2)          # keep both v7x TensorCores busy
    return _round_up(pl.cdiv(B, n_tiles), _MIN_TB)


def dqn_kernel(x_ref, w1_ref, b1_ref, w2_ref, b2_ref, w3_ref, b3_ref, o_ref):
    """Batch-in-lanes MLP: x (2, TB) -> Q-values (A_pad, TB)."""
    x = x_ref[...]                                   # (2, TB)
    w2 = w2_ref[...]                                 # (H, H)
    w3 = w3_ref[...]                                 # (A_pad, H)

    # Layer 1: K=2 contraction on the VPU (broadcast FMA), not the MXU.
    #   (H,1)*(1,TB) + (H,1)*(1,TB) + (H,1) -> (H,TB)
    h1 = jnp.tanh(
        w1_ref[:, 0:1] * x[0:1, :]
        + w1_ref[:, 1:2] * x[1:2, :]
        + b1_ref[...]
    )

    # Layer 2: (H,H) @ (H,TB) on the MXU, f32 accumulate; tanh/bias in f32.
    h2 = jnp.tanh(
        jnp.dot(w2, h1.astype(w2.dtype), preferred_element_type=jnp.float32)
        + b2_ref[...]
    )

    # Layer 3: (A_pad,H) @ (H,TB); lane-dense (unmasked) store of Q-values.
    o_ref[...] = (
        jnp.dot(w3, h2.astype(w3.dtype), preferred_element_type=jnp.float32)
        + b3_ref[...]
    ).astype(o_ref.dtype)


def prepare_dqn_params(params, matmul_dtype=jnp.float32):
    """One-time weight prep (hoisted out of the forward): transpose weights
    to (out, in), biases to columns, pad the action dim only to the sublane
    granule (8), and optionally store the MXU weights in bfloat16."""
    A = params["w3"].shape[1]
    A_pad = _round_up(A, _SUBLANE)
    return {
        "w1": params["w1"].T,                                   # (H, 2)
        "b1": params["b1"].reshape(-1, 1),                      # (H, 1)
        "w2": params["w2"].T.astype(matmul_dtype),              # (H, H)
        "b2": params["b2"].reshape(-1, 1),                      # (H, 1)
        "w3": jnp.pad(params["w3"].T,                           # (A_pad, H)
                      ((0, A_pad - A), (0, 0))).astype(matmul_dtype),
        "b3": jnp.pad(params["b3"].reshape(-1, 1),              # (A_pad, 1)
                      ((0, A_pad - A), (0, 0))),
    }


def dqn_forward(state, prep, num_actions, *, block_b=1024,
                out_dtype=jnp.float32):
    """state: (B, 2) float32; prep: output of prepare_dqn_params.
    Returns Q-values of shape (B, num_actions)."""
    B, F = state.shape
    A_pad = prep["w3"].shape[0]

    TB = _choose_tile(B, block_b)
    B_pad = _round_up(B, TB)

    # Batch-in-lanes: transpose the state once, outside the kernel.
    x_t = state.T                                               # (F, B)
    if B_pad != B:
        x_t = jnp.pad(x_t, ((0, 0), (0, B_pad - B)))

    # Grid-constant (VMEM-resident) weight blocks.
    const = lambda arr: pl.BlockSpec(arr.shape, lambda i: (0,) * arr.ndim)

    out = pl.pallas_call(
        dqn_kernel,
        out_shape=jax.ShapeDtypeStruct((A_pad, B_pad), out_dtype),
        grid=(B_pad // TB,),
        in_specs=[
            pl.BlockSpec((F, TB), lambda i: (0, i)),   # state tile (pipelined)
            const(prep["w1"]),                         # (H, 2)     resident
            const(prep["b1"]),                         # (H, 1)     resident
            const(prep["w2"]),                         # (H, H)     resident
            const(prep["b2"]),                         # (H, 1)     resident
            const(prep["w3"]),                         # (A_pad, H) resident
            const(prep["b3"]),                         # (A_pad, 1) resident
        ],
        out_specs=pl.BlockSpec((A_pad, TB), lambda i: (0, i)),
        compiler_params=pltpu.CompilerParams(
            dimension_semantics=("parallel",),
        ),
    )(x_t, prep["w1"], prep["b1"], prep["w2"], prep["b2"],
      prep["w3"], prep["b3"])

    # Drop padded action rows / batch columns; back to (B, A).
    return out[:num_actions, :B].T


def init_dqn_params(key, hidden_size, num_actions=5, in_features=2):
    """PyTorch-style Linear init: U(-1/sqrt(fan_in), 1/sqrt(fan_in))."""
    keys = jax.random.split(key, 6)

    def linear(kw, kb, fan_in, fan_out):
        bound = 1.0 / math.sqrt(fan_in)
        w = jax.random.uniform(
            kw, (fan_in, fan_out), jnp.float32, minval=-bound, maxval=bound)
        b = jax.random.uniform(
            kb, (fan_out,), jnp.float32, minval=-bound, maxval=bound)
        return w, b

    w1, b1 = linear(keys[0], keys[1], in_features, hidden_size)
    w2, b2 = linear(keys[2], keys[3], hidden_size, hidden_size)
    w3, b3 = linear(keys[4], keys[5], hidden_size, num_actions)
    return {"w1": w1, "b1": b1, "w2": w2, "b2": b2, "w3": w3, "b3": b3}


def dqn_reference(state, params):
    h1 = jnp.tanh(state @ params["w1"] + params["b1"])
    h2 = jnp.tanh(h1 @ params["w2"] + params["b2"])
    return h2 @ params["w3"] + params["b3"]


if __name__ == "__main__":
    key = jax.random.PRNGKey(0)
    k_params, k_state1, k_state2 = jax.random.split(key, 3)

    hidden_size = 32
    num_actions = 5

    params = init_dqn_params(k_params, hidden_size, num_actions)
    prep = prepare_dqn_params(params)          # one-time weight prep (f32)

    # Small batch (single grid step).
    state = jax.random.normal(k_state1, (8, 2), jnp.float32)
    values = jax.block_until_ready(dqn_forward(state, prep, num_actions))
    ref = dqn_reference(state, params)
    assert values.shape == (8, num_actions)
    assert jnp.allclose(values, ref, atol=1e-5, rtol=1e-5)

    # Non-multiple batch: exercises batch padding and a 2-step parallel grid.
    state2 = jax.random.normal(k_state2, (300, 2), jnp.float32)
    values2 = jax.block_until_ready(dqn_forward(state2, prep, num_actions))
    ref2 = dqn_reference(state2, params)
    assert values2.shape == (300, num_actions)
    assert jnp.allclose(values2, ref2, atol=1e-5, rtol=1e-5)

    print("KERNEL_OK")
</pallas_src>

<mosaic_0001>
module attributes {stable_mosaic.version = 11 : i64} {
  func.func @dqn_kernel(%arg0: i32, %arg1: memref<2x128xf32, #tpu.memory_space<vmem>>, %arg2: memref<32x2xf32, #tpu.memory_space<vmem>>, %arg3: memref<32x1xf32, #tpu.memory_space<vmem>>, %arg4: memref<32x32xf32, #tpu.memory_space<vmem>>, %arg5: memref<32x1xf32, #tpu.memory_space<vmem>>, %arg6: memref<8x32xf32, #tpu.memory_space<vmem>>, %arg7: memref<8x1xf32, #tpu.memory_space<vmem>>, %arg8: memref<8x128xf32, #tpu.memory_space<vmem>>) attributes {dimension_semantics = [#tpu.dimension_semantics<parallel>], iteration_bounds = array<i64: 1>, scalar_prefetch = 0 : i64, scratch_operands = 0 : i64, tpu.core_type = #tpu.core_type<tc>, window_params = [{transform_indices = @transform_0, window_bounds = array<i64: 2, 128>}, {pipeline_mode = #tpu.pipeline_mode<synchronous>, transform_indices = @transform_1, window_bounds = array<i64: 32, 2>}, {pipeline_mode = #tpu.pipeline_mode<synchronous>, transform_indices = @transform_2, window_bounds = array<i64: 32, 1>}, {pipeline_mode = #tpu.pipeline_mode<synchronous>, transform_indices = @transform_3, window_bounds = array<i64: 32, 32>}, {pipeline_mode = #tpu.pipeline_mode<synchronous>, transform_indices = @transform_4, window_bounds = array<i64: 32, 1>}, {pipeline_mode = #tpu.pipeline_mode<synchronous>, transform_indices = @transform_5, window_bounds = array<i64: 8, 32>}, {pipeline_mode = #tpu.pipeline_mode<synchronous>, transform_indices = @transform_6, window_bounds = array<i64: 8, 1>}, {transform_indices = @transform_7, window_bounds = array<i64: 8, 128>}]} {
    %c0 = arith.constant 0 : index
    %c0_0 = arith.constant 0 : index
    %0 = vector.load %arg1[%c0, %c0_0] : memref<2x128xf32, #tpu.memory_space<vmem>>, vector<2x128xf32>
    %c0_1 = arith.constant 0 : index
    %c0_2 = arith.constant 0 : index
    %1 = vector.load %arg4[%c0_1, %c0_2] : memref<32x32xf32, #tpu.memory_space<vmem>>, vector<32x32xf32>
    %c0_3 = arith.constant 0 : index
    %c0_4 = arith.constant 0 : index
    %2 = vector.load %arg6[%c0_3, %c0_4] : memref<8x32xf32, #tpu.memory_space<vmem>>, vector<8x32xf32>
    %c0_5 = arith.constant 0 : index
    %c0_6 = arith.constant 0 : index
    %3 = vector.load %arg2[%c0_5, %c0_6] : memref<32x2xf32, #tpu.memory_space<vmem>>, vector<32x1xf32>
    %4 = vector.extract_strided_slice %0 {offsets = [0, 0], sizes = [1, 128], strides = [1, 1]} : vector<2x128xf32> to vector<1x128xf32>
    %5 = vector.broadcast %3 : vector<32x1xf32> to vector<32x128xf32>
    %6 = vector.broadcast %4 : vector<1x128xf32> to vector<32x128xf32>
    %7 = arith.mulf %5, %6 : vector<32x128xf32>
    %c0_7 = arith.constant 0 : index
    %c1 = arith.constant 1 : index
    %8 = vector.load %arg2[%c0_7, %c1] : memref<32x2xf32, #tpu.memory_space<vmem>>, vector<32x1xf32>
    %9 = vector.extract_strided_slice %0 {offsets = [1, 0], sizes = [1, 128], strides = [1, 1]} : vector<2x128xf32> to vector<1x128xf32>
    %10 = vector.broadcast %8 : vector<32x1xf32> to vector<32x128xf32>
    %11 = vector.broadcast %9 : vector<1x128xf32> to vector<32x128xf32>
    %12 = arith.mulf %10, %11 : vector<32x128xf32>
    %13 = arith.addf %7, %12 : vector<32x128xf32>
    %c0_8 = arith.constant 0 : index
    %c0_9 = arith.constant 0 : index
    %14 = vector.load %arg3[%c0_8, %c0_9] : memref<32x1xf32, #tpu.memory_space<vmem>>, vector<32x1xf32>
    %15 = vector.broadcast %14 : vector<32x1xf32> to vector<32x128xf32>
    %16 = arith.addf %13, %15 : vector<32x128xf32>
    %17 = math.tanh %16 : vector<32x128xf32>
    %cst = arith.constant dense<0.000000e+00> : vector<32x128xf32>
    %18 = tpu.matmul %1, %17, %cst {dimension_numbers = #tpu.dot_dimension_numbers<[1], [0], [0], [1], [0, 0, 1, 1], [], []>} : vector<32x32xf32>, vector<32x128xf32>, vector<32x128xf32> -> vector<32x128xf32>
    %c0_10 = arith.constant 0 : index
    %c0_11 = arith.constant 0 : index
    %19 = vector.load %arg5[%c0_10, %c0_11] : memref<32x1xf32, #tpu.memory_space<vmem>>, vector<32x1xf32>
    %20 = vector.broadcast %19 : vector<32x1xf32> to vector<32x128xf32>
    %21 = arith.addf %18, %20 : vector<32x128xf32>
    %22 = math.tanh %21 : vector<32x128xf32>
    %cst_12 = arith.constant dense<0.000000e+00> : vector<8x128xf32>
    %23 = tpu.matmul %2, %22, %cst_12 {dimension_numbers = #tpu.dot_dimension_numbers<[1], [0], [0], [1], [0, 0, 1, 1], [], []>} : vector<8x32xf32>, vector<32x128xf32>, vector<8x128xf32> -> vector<8x128xf32>
    %c0_13 = arith.constant 0 : index
    %c0_14 = arith.constant 0 : index
    %24 = vector.load %arg7[%c0_13, %c0_14] : memref<8x1xf32, #tpu.memory_space<vmem>>, vector<8x1xf32>
    %25 = vector.broadcast %24 : vector<8x1xf32> to vector<8x128xf32>
    %26 = arith.addf %23, %25 : vector<8x128xf32>
    %c0_15 = arith.constant 0 : index
    %c0_16 = arith.constant 0 : index
    %27 = vector.load %arg8[%c0_15, %c0_16] : memref<8x128xf32, #tpu.memory_space<vmem>>, vector<8x128xf32>
    tpu.vector_store %arg8[%c0_15, %c0_16], %26 {strides = array<i32>} : memref<8x128xf32, #tpu.memory_space<vmem>>, vector<8x128xf32>,
    return
  }
  func.func @transform_0(%arg0: i32) -> (i32, i32) {
    %c0_i32 = arith.constant 0 : i32
    %c0_i32_0 = arith.constant 0 : i32
    return %c0_i32, %arg0 : i32, i32
  }
  func.func @transform_1(%arg0: i32) -> (i32, i32) {
    %c0_i32 = arith.constant 0 : i32
    %c0_i32_0 = arith.constant 0 : i32
    %c0_i32_1 = arith.constant 0 : i32
    return %c0_i32, %c0_i32_0 : i32, i32
  }
  func.func @transform_2(%arg0: i32) -> (i32, i32) {
    %c0_i32 = arith.constant 0 : i32
    %c0_i32_0 = arith.constant 0 : i32
    %c0_i32_1 = arith.constant 0 : i32
    return %c0_i32, %c0_i32_0 : i32, i32
  }
  func.func @transform_3(%arg0: i32) -> (i32, i32) {
    %c0_i32 = arith.constant 0 : i32
    %c0_i32_0 = arith.constant 0 : i32
    %c0_i32_1 = arith.constant 0 : i32
    return %c0_i32, %c0_i32_0 : i32, i32
  }
  func.func @transform_4(%arg0: i32) -> (i32, i32) {
    %c0_i32 = arith.constant 0 : i32
    %c0_i32_0 = arith.constant 0 : i32
    %c0_i32_1 = arith.constant 0 : i32
    return %c0_i32, %c0_i32_0 : i32, i32
  }
  func.func @transform_5(%arg0: i32) -> (i32, i32) {
    %c0_i32 = arith.constant 0 : i32
    %c0_i32_0 = arith.constant 0 : i32
    %c0_i32_1 = arith.constant 0 : i32
    return %c0_i32, %c0_i32_0 : i32, i32
  }
  func.func @transform_6(%arg0: i32) -> (i32, i32) {
    %c0_i32 = arith.constant 0 : i32
    %c0_i32_0 = arith.constant 0 : i32
    %c0_i32_1 = arith.constant 0 : i32
    return %c0_i32, %c0_i32_0 : i32, i32
  }
  func.func @transform_7(%arg0: i32) -> (i32, i32) {
    %c0_i32 = arith.constant 0 : i32
    %c0_i32_0 = arith.constant 0 : i32
    return %c0_i32, %arg0 : i32, i32
  }
}

</mosaic_0001>

<bundles_post_ra>
// kernel: tpu_custom_call.1
= control target key start
LH: loop header
LB: loop body
LE: loop exit
PB: predicated region body
PF: predicated region fallthrough
CT: control target
= control target key end

     0   :  { %v454_v2 = vmov 1   ;;  %s574_s0 = inlined_call_operand.vmem [shape: f32[2,128], index: 0, kind: input, shape index: {}]   ;;  %s575_s1 = inlined_call_operand.vmem [shape: f32[32,2], index: 1, kind: input, shape index: {}]   ;;  %s576_s2 = inlined_call_operand.vmem [shape: f32[32,1], index: 2, kind: input, shape index: {}]   ;;  %s577_s3 = inlined_call_operand.vmem [shape: f32[32,32], index: 3, kind: input, shape index: {}]   ;;  %s578_s4 = inlined_call_operand.vmem [shape: f32[32,1], index: 4, kind: input, shape index: {}]   ;;  %s579_s5 = inlined_call_operand.vmem [shape: f32[8,32], index: 5, kind: input, shape index: {}]   ;;  %s580_s6 = inlined_call_operand.vmem [shape: f32[8,1], index: 6, kind: input, shape index: {}]   ;;  %s581_s7 = inlined_call_operand.hbm [shape: f32[8,128], index: 7, kind: output, shape index: {}]  }
   0x1   :  { %v35_v0 = vld [vmem:[%s575_s1 + $0x10] sm:$0xff]  ;;  %v33_v1 = vld [vmem:[%s575_s1] sm:$0xff]  ;;  %410 = vset.pattern.permute.xlu0 %v454_v2  ;;  %408 = vset.pattern.permute.xlu1 %v454_v2  ;;  %v34_v3 = vld [vmem:[%s575_s1 + $0x8] sm:$0xff] }
   0x2   :  { %74 = vperm.xlu0 %410, %v35_v0   ;;  %66 = vperm.xlu1 %408, %v33_v1  }
   0x3   :  { %12 = vsyncpa [#allocation3], 0  ;;  %v455_v4 = vmov 0   ;;  %v36_v5 = vld [vmem:[%s575_s1 + $0x18] sm:$0xff]  ;;  %v94_v6 = vld [vmem:[%s576_s2 + $0x8] sm:$0xff]  ;;  %vm149_vm0 = vcmask 261120   ;;  %v57_v16 = vlaneseq }
   0x4   :  { %v93_v7 = vld [vmem:[%s576_s2] sm:$0xff]  ;;  %v95_v9 = vld [vmem:[%s576_s2 + $0x10] sm:$0xff]  ;;  %v96_v11 = vld [vmem:[%s576_s2 + $0x18] sm:$0xff]  ;;  %v456_v60 = vmov 0.0|0.0   ;;  %vm457_vm1 = vmmov 0   ;;  %v458_v61 = vmov 0.0  }
   0x5   :  { %v125_v8 = vld [vmem:[%s578_s4] sm:$0xff]  ;;  %v127_v10 = vld [vmem:[%s578_s4 + $0x10] sm:$0xff]  ;;  %v126_v13 = vld [vmem:[%s578_s4 + $0x8] sm:$0xff]  ;;  %v58_v19 = vshrl.u32 %v57_v16, 7  ;;  %396 = vmatprep.subr.bf16.mxu1 %v456_v60  ;;  %385 = vmatprep.mubr.msk.f32.mxu1 %vm457_vm1, %v458_v61  ;;  %s459_s10 = smov [#allocation2]  }
   0x6   :  { %411 = vset.pattern.permute.xlu0 %v455_v4  ;;  %70 = vperm.xlu1 %408, %v34_v3   ;;  %v251_v12 = vld [vmem:[%s580_s6] sm:$0xff]  ;;  %v128_v14 = vld [vmem:[%s578_s4 + $0x18] sm:$0xff]  ;;  %v29_v57 = vld [vmem:[%s577_s3 + $0x8] sm:$0xff]  ;;  %s337_s11 = sshll.u32 %s459_s10, 4  ;;  %s338_s11 = int_to_ptr.vmem [resolvable:$true] %s337_s11 }
   0x7   :  { %39 = vperm.xlu0 %411, %v33_v1   ;;  %v28_v15 = vld [vmem:[%s577_s3] sm:$0xff]  ;;  %v59_v22 = vsub.s32 0, %v58_v19  ;;  %v83_v23 = vsub.s32 1, %v58_v19  ;;  %v30_v58 = vld [vmem:[%s577_s3 + $0x10] sm:$0xff]  ;;  %v31_v59 = vld [vmem:[%s577_s3 + $0x18] sm:$0xff]  ;;  %s430_s12 = scalar_lea.vmem %s338_s11, 128  ;;  %p435_p1 = scmp.lt.s32.totalorder %s338_s11, %s338_s11 }
   0x8   :  { %371 = vmatprep.mubr.msk.f32.mxu0 %vm149_vm0, %v28_v15  ;;  %v27_v24 = vld [vmem:[%s574_s0] sm:$0x3]  ;;  %p431_p0 = scmp.ne.s32.totalorder %s338_s11, %s430_s12  ;;  %p436_p2 = scmp.lt.s32.totalorder %s430_s12, %s430_s12 }
   0x9   :  { %v60_v27 = vrot.slane %v27_v24, %v59_v22  ;;  %v84_v28 = vrot.slane %v27_v24, %v83_v23  ;;  %v32_v16 = vld [vmem:[%s579_s5] sm:$0xff] }
   0xa   :  { %409 = vset.pattern.permute.xlu1 %v455_v4  ;;  %p437_p3 = por %p436_p2, %p435_p1 }
   0xb   :  { %44 = vperm.xlu0 %411, %v34_v3   ;;  %54 = vperm.xlu1 %409, %v36_v5  }
   0xc   :  { %p438_p4 = pnand %p437_p3, %p431_p0 }
   0xf   :  { %49 = vperm.xlu0 %411, %v35_v0   ;;  %412 = vset.pattern.permute.xlu1 %v454_v2 }
  0x10   :  { %78 = vperm.xlu1 %412, %v36_v5  }
  0x13   :  { %104 = vperm.xlu0 %411, %v94_v6  }
  0x14   :  { %413 = vset.pattern.permute.xlu1 %v455_v4 }
  0x15   :  { %99 = vperm.xlu1 %413, %v93_v7  }
  0x17   :  { %131 = vperm.xlu0 %411, %v125_v8  }
  0x19   :  { %109 = vperm.xlu1 %413, %v95_v9  }
  0x1b   :  { %141 = vperm.xlu0 %411, %v127_v10  }
  0x1d   :  { %114 = vperm.xlu1 %413, %v96_v11  }
  0x1f   :  { %254 = vperm.xlu0 %411, %v251_v12  }
  0x21   :  { %136 = vperm.xlu1 %413, %v126_v13  }
  0x25   :  { %146 = vperm.xlu1 %413, %v128_v14  }
  0x81   :  { %v67_v17 = vpop.permute.xlu1 %66  ;;  %v75_v18 = vpop.permute.xlu0 %74 }
  0x82   :  { %v85_v34 = vmul.f32 %v84_v28, %v67_v17  ;;  %v87_v42 = vmul.f32 %v84_v28, %v75_v18 }
  0x85   :  { %v71_v20 = vpop.permute.xlu1 %70 }
  0x86   :  { %v40_v21 = vpop.permute.xlu0 %39  ;;  %v86_v31 = vmul.f32 %v84_v28, %v71_v20 }
  0x87   :  { %v61_v32 = vmul.f32 %v60_v27, %v40_v21 }
  0x89   :  { %v89_v38 = vadd.f32 %v85_v34, %v61_v32 }
  0x8a   :  { %v45_v25 = vpop.permute.xlu0 %44  ;;  %v55_v26 = vpop.permute.xlu1 %54 }
  0x8b   :  { %v62_v29 = vmul.f32 %v60_v27, %v45_v25  ;;  %v64_v46 = vmul.f32 %v60_v27, %v55_v26 }
  0x8d   :  { %v90_v35 = vadd.f32 %v86_v31, %v62_v29 }
  0x8e   :  { %v50_v30 = vpop.permute.xlu0 %49 }
  0x8f   :  { %v79_v33 = vpop.permute.xlu1 %78  ;;  %v63_v39 = vmul.f32 %v60_v27, %v50_v30 }
  0x90   :  { %v88_v43 = vmul.f32 %v84_v28, %v79_v33 }
  0x91   :  { %v91_v45 = vadd.f32 %v87_v42, %v63_v39 }
  0x92   :  { %v105_v36 = vpop.permute.xlu0 %104  ;;  %v92_v48 = vadd.f32 %v88_v43, %v64_v46 }
  0x93   :  { %v118_v37 = vadd.f32 %v105_v36, %v90_v35 }
  0x94   :  { %v100_v40 = vpop.permute.xlu1 %99 }
  0x95   :  { %v117_v41 = vadd.f32 %v100_v40, %v89_v38  ;;  %414 = vtanh.f32 %v118_v37 }
  0x96   :  { %v132_v63 = vpop.permute.xlu0 %131 }
  0x97   :  { %416 = vtanh.f32 %v117_v41 }
  0x98   :  { %v110_v44 = vpop.permute.xlu1 %109 }
  0x99   :  { %v119_v47 = vadd.f32 %v110_v44, %v91_v45 }
  0x9a   :  { %v142_v6 = vpop.permute.xlu0 %141 }
  0x9b   :  { %418 = vtanh.f32 %v119_v47 }
  0x9c   :  { %v115_v49 = vpop.permute.xlu1 %114 }
  0x9d   :  { %v120_v50 = vadd.f32 %v115_v49, %v92_v48 }
  0x9e   :  { %v255_v17 = vpop.permute.xlu0 %254 }
  0x9f   :  { %420 = vtanh.f32 %v120_v50  ;;  %v415_v51 = vpop.eup %414 }
  0xa0   :  { %v137_v62 = vpop.permute.xlu1 %136 }
  0xa1   :  { %v417_v52 = vpop.eup %416 }
  0xa2   :  { %v388_v53 = vpack.c.bf16 %v415_v51, %v417_v52 }
  0xa4   :  { %389 = vmatprep.subr.bf16.mxu0 %v388_v53  ;;  %v147_v4 = vpop.permute.xlu1 %146 }
  0xa5   :  { %391 = vmatpush3.bf16.msra.mxu0 %v388_v53  ;;  %v419_v54 = vpop.eup %418 }
  0xa9   :  { %v421_v55 = vpop.eup %420 }
  0xaa   :  { %v392_v56 = vpack.c.bf16 %v421_v55, %v419_v54 }
  0xac   :  { %393 = vmatprep.subr.bf16.mxu0 %v392_v56 }
  0xad   :  { %395 = vmatpush3.bf16.msra.mxu0 %v392_v56 }
  0xb0   :  { %372 = vmatmul.mubr.msk.f32.vlgmr.msra.gmra.mrb[0].mxu0 %vm149_vm0, %v29_v57 }
  0xb1   :  { %374 = vmatprep.mubr.msk.f32.mxu0 %vm149_vm0, %v30_v58 }
  0xb4   :  { %375 = vmatmul.mubr.msk.f32.gmra.mrb[2].mxu0 %vm149_vm0, %v31_v59 }
 0x183   :  { %v373_v0 = vpop.f32.mrb[0].mxu0 }
 0x184   :  { %v234_v1 = vadd.f32 %v373_v0, %v137_v62  ;;  %v228_v2 = vpop.f32.mrb[1].mxu0 }
 0x185   :  { %v229_v3 = vadd.f32 %v228_v2, %v132_v63 }
 0x186   :  { %422 = vtanh.f32 %v234_v1 }
 0x187   :  { %424 = vtanh.f32 %v229_v3  ;;  %v376_v5 = vpop.f32.mrb[2].mxu0 }
 0x188   :  { %v244_v7 = vadd.f32 %v376_v5, %v147_v4  ;;  %v238_v8 = vpop.f32.mrb[3].mxu0 }
 0x189   :  { %v239_v9 = vadd.f32 %v238_v8, %v142_v6 }
 0x18a   :  { %426 = vtanh.f32 %v244_v7 }
 0x18b   :  { %428 = vtanh.f32 %v239_v9 }
 0x190   :  { %v423_v10 = vpop.eup %422 }
 0x191   :  { %v425_v11 = vpop.eup %424 }
 0x192   :  { %v397_v12 = vpack.c.bf16 %v423_v10, %v425_v11 }
 0x194   :  { %v427_v13 = vpop.eup %426  ;;  %398 = vmatpush3.bf16.msra.mxu1 %v397_v12 }
 0x195   :  { %v429_v14 = vpop.eup %428  ;;  %399 = vmatprep.subr.bf16.mxu1 %v456_v60 }
 0x196   :  { %v400_v15 = vpack.c.bf16 %v427_v13, %v429_v14 }
 0x198   :  { %401 = vmatpush3.bf16.msra.mxu1 %v400_v15 }
 0x19b   :  { %386 = vmatmul.mubr.msk.f32.vlgmr.msra.gmra.mrb[0].mxu1 %vm149_vm0, %v32_v16 }
 0x26e   :  { %v326_v18 = vpop.f32.mrb[0].mxu1 }
 0x26f   :  { %v327_v19 = vadd.f32 %v326_v18, %v255_v17  ;;  %v387_v20 = vpop.f32.mrb[1].mxu1 }
 0x271   :  { %330 = vst [vmem:[#allocation2] sm:$0xff] %v327_v19 }
 0x272   :  { %441 = shalt.err (!%p438_p4)
}
 0x273   :  { %s442_s5 = scalar_lea.hbm %s581_s7, 128 }
 0x274   :  { %p443_p5 = scmp.ne.s32.totalorder %s581_s7, %s442_s5  ;;  %p446_p6 = scmp.lt.u32.totalorder %s442_s5, %s581_s7 }
 0x276   :  { %p448_p7 = pnand %p446_p6, %p443_p5 }
 0x278   :  { %451 = shalt.err (!%p448_p7)
}
 0x279   :  { %340 = dma.vmem_to_hbm [thread:$0]  %s338_s11, 128, %s581_s7, [#allocation3]  }
 0x27a   :  { %452 = dma.done.wait [#allocation3], 128  }
 0x27b   :  { %453 = vsyncadd [#allocation3], 4294967168 }
 0x27c   :  { %344 = vsyncpa [#allocation3], 1 }

</bundles_post_ra>
